<compile_context>
chip_gen: v6e
topology: v6e:2x2x1
jax: 0.10.0
libtpu: 0.0.40
codegen_flags: <defaults>
</compile_context>

<pallas_src>
import jax
import jax.numpy as jnp
from jax.experimental import pallas as pl
from jax.experimental.pallas import tpu as pltpu


def _round_up(n, m):
    return ((n + m - 1) // m) * m


def _vmem_budget_bytes():
    """Per-kernel VMEM working-set budget, derived from the device when possible."""
    try:
        cap = int(pltpu.get_tpu_info().vmem_capacity_bytes)
    except Exception:
        cap = 64 * 1024 * 1024          # conservative fallback: v7x per-TC VMEM
    # Keep ~half of physical VMEM as pipelining / compiler headroom.
    return max(16 * 1024 * 1024, min(cap // 2 - (4 << 20), 96 << 20))


def _fused_vmem_bytes(c_pad, hw_pad, itemsize):
    blocks = 4 * c_pad * hw_pad * itemsize      # x + out blocks, double-buffered
    f32_tmp = 2 * c_pad * hw_pad * 4            # f32 matmul result + residual upcast
    small = 8 * c_pad * c_pad * 4               # energy / softmax temporaries
    return blocks + f32_tmp + small


def _choose_hw_tiling(hw, c_pad, itemsize, budget):
    """Largest lane-multiple HW tile whose phase-2 double-buffered set fits budget."""
    hw128 = _round_up(hw, 128)
    per_col = 4 * c_pad * itemsize + 8 * c_pad                 # x/out blocks (2x) + f32 temps
    fixed = 2 * c_pad * c_pad * itemsize + 16 * c_pad * c_pad  # attention + scratch
    max_t = (budget - fixed) // per_col
    max_t = max(128, 128 * (max_t // 128))
    if hw128 <= max_t:
        return hw128, hw128                                    # whole HW in one tile
    t = 128
    while t * 2 <= min(max_t, 4096):
        t *= 2
    return t, _round_up(hw128, t)                              # pad HW to a tile multiple


def _masked_softmax(energy, c_real, c_pad):
    """softmax(rowmax(E) - E) == softmax(-E); stabilized with the row min.

    Padded channel columns are masked so they never enter the denominator.
    """
    if c_pad > c_real:
        col = jax.lax.broadcasted_iota(jnp.int32, (c_pad, c_pad), 1)
        energy = jnp.where(col < c_real, energy, jnp.float32(1e30))
    e_min = jnp.min(energy, axis=-1, keepdims=True)
    p = jnp.exp(e_min - energy)
    denom = jnp.sum(p, axis=-1, keepdims=True)
    # Exact divide: the approx-EUP reciprocal saves nothing on a (Cp,1) vector
    # evaluated once per batch element and its non-Mosaic fallback loses ~2^-8.
    return p / denom


def _make_attention_kernel(c_real, c_pad):
    """Phase 1: accumulate E = X X^T over HW tiles; softmax + gamma fold at the end."""

    def kernel(gamma_ref, x_ref, attn_ref, energy_acc):
        @pl.when(pl.program_id(1) == 0)
        def _init():
            energy_acc[...] = jnp.zeros_like(energy_acc)

        x = x_ref[...]                                         # (Cp, tHW), native dtype
        # Transpose-free Gram update: contract the last dim of both operands
        # (MXU consumes the transposed RHS directly), f32 accumulation.
        energy_acc[...] += jax.lax.dot_general(
            x, x, (((1,), (1,)), ((), ())),
            preferred_element_type=jnp.float32)

        @pl.when(pl.program_id(1) == pl.num_programs(1) - 1)
        def _finalize():
            attn = _masked_softmax(energy_acc[...], c_real, c_pad)
            # Fold gamma here so phase 2 is just (gamma*A) @ x + x.
            attn_ref[...] = (gamma_ref[0] * attn).astype(attn_ref.dtype)

    return kernel


def _apply_kernel(attn_ref, x_ref, o_ref):
    """Phase 2: out_tile = (gamma*A) @ x_tile + x_tile, streamed over HW."""
    x = x_ref[...]
    out = jnp.dot(attn_ref[...], x, preferred_element_type=jnp.float32)
    o_ref[...] = (out + x.astype(jnp.float32)).astype(o_ref.dtype)


def _make_fused_kernel(c_real, c_pad):
    """Single-pass kernel used when one batch element's (Cp, HWp) slab fits VMEM:
    x is read from HBM once and the attention matrix never round-trips HBM."""

    def kernel(gamma_ref, x_ref, o_ref):
        x = x_ref[...]                                         # (Cp, HWp), native dtype
        energy = jax.lax.dot_general(
            x, x, (((1,), (1,)), ((), ())),
            preferred_element_type=jnp.float32)
        attn = (gamma_ref[0] * _masked_softmax(energy, c_real, c_pad)).astype(x.dtype)
        out = jnp.dot(attn, x, preferred_element_type=jnp.float32)
        o_ref[...] = (out + x.astype(jnp.float32)).astype(o_ref.dtype)

    return kernel


def cam_module(x, gamma, *, fuse=None):
    """Pallas implementation of CAM_Module.forward.

    Args:
      x:     (B, C, H, W) feature maps.
      gamma: scalar / (1,) learnable scale (zero-initialized in the PyTorch module).
      fuse:  None → auto (fuse when a batch element's slab fits the VMEM budget);
             True / False → force the fused / two-phase path.
    Returns:
      (B, C, H, W) = gamma * (channel_attention @ x) + x
    """
    B, C, H, W = x.shape
    HW = H * W
    dtype = x.dtype
    itemsize = int(jnp.dtype(dtype).itemsize)

    # Pad C to the dtype's native sublane tile (8 f32 / 16 bf16 / 32 int8); HW to
    # a lane multiple so every tile and output store stays lane-dense.
    sub = max(8, 32 // itemsize)
    Cp = _round_up(max(C, sub), sub)

    gamma = jnp.asarray(gamma, jnp.float32).reshape((1,))

    budget = _vmem_budget_bytes()
    vmem_limit = int(min(budget + (16 << 20), 112 << 20))
    HWp_full = _round_up(HW, 128)

    if fuse is None:
        fuse = _fused_vmem_bytes(Cp, HWp_full, itemsize) <= budget

    if fuse:
        t_hw, HWp, n_hw = HWp_full, HWp_full, 1
    else:
        t_hw, HWp = _choose_hw_tiling(HW, Cp, itemsize, budget)
        n_hw = HWp // t_hw

    x_flat = x.reshape(B, C, HW)
    if Cp != C or HWp != HW:
        x_flat = jnp.pad(x_flat, ((0, 0), (0, Cp - C), (0, HWp - HW)))

    if fuse:
        cost = pl.CostEstimate(
            flops=int(B * (4 * Cp * Cp * HWp + 6 * Cp * Cp + 2 * Cp * HWp)),
            transcendentals=int(B * Cp * Cp),
            bytes_accessed=int(2 * B * Cp * HWp * itemsize),
        )
        out_flat = pl.pallas_call(
            _make_fused_kernel(C, Cp),
            out_shape=jax.ShapeDtypeStruct((B, Cp, HWp), dtype),
            grid=(B,),
            in_specs=[
                pl.BlockSpec(memory_space=pltpu.MemorySpace.SMEM),        # gamma
                pl.BlockSpec((None, Cp, HWp), lambda b: (b, 0, 0)),       # x slab
            ],
            out_specs=pl.BlockSpec((None, Cp, HWp), lambda b: (b, 0, 0)),
            compiler_params=pltpu.CompilerParams(
                dimension_semantics=("parallel",),
                vmem_limit_bytes=vmem_limit,
            ),
            cost_estimate=cost,
        )(gamma, x_flat)
        return out_flat[:, :C, :HW].reshape(B, C, H, W)

    # ---- Phase 1: gamma * softmax(rowmax(X X^T) - X X^T), per batch element. ----
    # NOTE: only the batch axis is parallel here; at B == 1 one v7x TensorCore
    # idles during this (cheaper, Cp^2-sized) phase.
    attn_cost = pl.CostEstimate(
        flops=int(B * (2 * Cp * Cp * HWp + 6 * Cp * Cp)),
        transcendentals=int(B * Cp * Cp),
        bytes_accessed=int(B * Cp * HWp * itemsize + B * Cp * Cp * itemsize),
    )
    attention = pl.pallas_call(
        _make_attention_kernel(C, Cp),
        out_shape=jax.ShapeDtypeStruct((B, Cp, Cp), dtype),
        grid=(B, n_hw),
        in_specs=[
            pl.BlockSpec(memory_space=pltpu.MemorySpace.SMEM),            # gamma
            pl.BlockSpec((None, Cp, t_hw), lambda b, h: (b, 0, h)),       # x tiles
        ],
        out_specs=pl.BlockSpec((None, Cp, Cp), lambda b, h: (b, 0, 0)),
        scratch_shapes=[pltpu.VMEM((Cp, Cp), jnp.float32)],               # energy acc
        compiler_params=pltpu.CompilerParams(
            dimension_semantics=("parallel", "arbitrary"),
            vmem_limit_bytes=vmem_limit,
        ),
        cost_estimate=attn_cost,
    )(gamma, x_flat)

    # ---- Phase 2: out = (gamma*A) @ x + x, streamed over HW (both axes parallel). ----
    apply_cost = pl.CostEstimate(
        flops=int(B * (2 * Cp * Cp * HWp + 2 * Cp * HWp)),
        transcendentals=0,
        bytes_accessed=int(2 * B * Cp * HWp * itemsize + B * Cp * Cp * itemsize),
    )
    out_flat = pl.pallas_call(
        _apply_kernel,
        out_shape=jax.ShapeDtypeStruct((B, Cp, HWp), dtype),
        grid=(B, n_hw),
        in_specs=[
            pl.BlockSpec((None, Cp, Cp), lambda b, h: (b, 0, 0)),         # gamma*attn
            pl.BlockSpec((None, Cp, t_hw), lambda b, h: (b, 0, h)),       # x tiles
        ],
        out_specs=pl.BlockSpec((None, Cp, t_hw), lambda b, h: (b, 0, h)),
        compiler_params=pltpu.CompilerParams(
            dimension_semantics=("parallel", "parallel"),                 # 2 TCs on v7x
            vmem_limit_bytes=vmem_limit,
        ),
        cost_estimate=apply_cost,
    )(attention, x_flat)

    return out_flat[:, :C, :HW].reshape(B, C, H, W)


def _cam_reference(x, gamma):
    """Pure-JAX reference mirroring the PyTorch forward (accurate f32 matmuls)."""
    B, C, H, W = x.shape
    xf = x.reshape(B, C, H * W).astype(jnp.float32)
    energy = jnp.einsum("bcn,bkn->bck", xf, xf, precision="highest")
    energy_new = jnp.max(energy, axis=-1, keepdims=True) - energy
    attention = jax.nn.softmax(energy_new, axis=-1)
    out = jnp.einsum("bck,bkn->bcn", attention, xf, precision="highest")
    out = out.reshape(B, C, H, W)
    g = jnp.asarray(gamma, jnp.float32).reshape(())
    return (g * out + x.astype(jnp.float32)).astype(x.dtype)


if __name__ == "__main__":
    key = jax.random.PRNGKey(0)
    B, C, H, W = 2, 4, 16, 16
    # Mild scaling keeps the (exp-amplified) channel energies well-conditioned so
    # kernel-vs-reference differences stay at accumulation-order level.
    x = 0.1 * jax.random.normal(key, (B, C, H, W), dtype=jnp.float32)

    # gamma matches nn.Parameter(torch.zeros(1)): output must equal input exactly.
    gamma0 = jnp.zeros((1,), dtype=jnp.float32)
    out0 = cam_module(x, gamma0)                       # auto path (fused at this size)
    jax.block_until_ready(out0)
    ref0 = _cam_reference(x, gamma0)
    assert jnp.allclose(out0, ref0, atol=1e-5, rtol=1e-5)

    # Nonzero gamma: exercise both the fused and two-phase paths.
    gamma1 = jnp.asarray([0.7], dtype=jnp.float32)
    out_fused = cam_module(x, gamma1, fuse=True)
    out_split = cam_module(x, gamma1, fuse=False)
    jax.block_until_ready((out_fused, out_split))
    ref1 = _cam_reference(x, gamma1)

    # The two paths run identical in-kernel math → tight internal cross-check.
    assert jnp.allclose(out_fused, out_split, atol=1e-5, rtol=1e-5)
    # Against the f32 reference: allow for MXU f32 contraction passes + exp
    # amplification of tiny energy differences.
    assert jnp.allclose(out_fused, ref1, atol=1e-2, rtol=1e-2)
    assert jnp.allclose(out_split, ref1, atol=1e-2, rtol=1e-2)

    print("KERNEL_OK")
</pallas_src>

<mosaic_0001>
module attributes {stable_mosaic.version = 11 : i64} {
  func.func @kernel(%arg0: i32, %arg1: memref<1xf32, #tpu.memory_space<smem>>, %arg2: memref<1x8x256xf32, #tpu.memory_space<vmem>>, %arg3: memref<1x8x256xf32, #tpu.memory_space<vmem>>) attributes {dimension_semantics = [#tpu.dimension_semantics<parallel>], iteration_bounds = array<i64: 2>, scalar_prefetch = 0 : i64, scratch_operands = 0 : i64, tpu.core_type = #tpu.core_type<tc>, window_params = [{transform_indices = @transform_0, window_bounds = array<i64: 1>}, {transform_indices = @transform_1, window_bounds = array<i64: 1, 8, 256>}, {transform_indices = @transform_2, window_bounds = array<i64: 1, 8, 256>}]} {
    %c0 = arith.constant 0 : index
    %c0_0 = arith.constant 0 : index
    %c0_1 = arith.constant 0 : index
    %0 = vector.load %arg2[%c0, %c0_0, %c0_1] : memref<1x8x256xf32, #tpu.memory_space<vmem>>, vector<1x8x256xf32>
    %1 = vector.shape_cast %0 : vector<1x8x256xf32> to vector<8x256xf32>
    %cst = arith.constant dense<0.000000e+00> : vector<8x8xf32>
    %2 = tpu.matmul %1, %1, %cst {dimension_numbers = #tpu.dot_dimension_numbers<[1], [1], [0], [0], [0, 0, 1, 0], [], []>} : vector<8x256xf32>, vector<8x256xf32>, vector<8x8xf32> -> vector<8x8xf32>
    %c0_2 = arith.constant 0 : index
    %3 = memref.load %arg1[%c0_2] : memref<1xf32, #tpu.memory_space<smem>>
    %4 = tpu.iota {dimensions = array<i32: 1>} : vector<8x8xi32>
    %c4_i32 = arith.constant 4 : i32
    %5 = vector.broadcast %c4_i32 : i32 to vector<8x8xi32>
    %6 = arith.cmpi slt, %4, %5 : vector<8x8xi32>
    %cst_3 = arith.constant 1.000000e+30 : f32
    %7 = vector.broadcast %cst_3 : f32 to vector<8x8xf32>
    %8 = arith.select %6, %2, %7 : vector<8x8xi1>, vector<8x8xf32>
    %cst_4 = arith.constant dense<0x7F800000> : vector<8xf32>
    %9 = vector.multi_reduction <minimumf>, %8, %cst_4 [1] : vector<8x8xf32> to vector<8xf32>
    %10 = vector.shape_cast %9 : vector<8xf32> to vector<8x1xf32>
    %11 = vector.broadcast %10 : vector<8x1xf32> to vector<8x8xf32>
    %12 = arith.subf %11, %8 : vector<8x8xf32>
    %13 = math.exp %12 : vector<8x8xf32>
    %cst_5 = arith.constant dense<0.000000e+00> : vector<8xf32>
    %14 = vector.multi_reduction <add>, %13, %cst_5 [1] : vector<8x8xf32> to vector<8xf32>
    %15 = vector.shape_cast %14 : vector<8xf32> to vector<8x1xf32>
    %16 = vector.broadcast %15 : vector<8x1xf32> to vector<8x8xf32>
    %17 = arith.divf %13, %16 : vector<8x8xf32>
    %18 = vector.broadcast %3 : f32 to vector<8x8xf32>
    %19 = arith.mulf %18, %17 : vector<8x8xf32>
    %cst_6 = arith.constant dense<0.000000e+00> : vector<8x256xf32>
    %20 = tpu.matmul %19, %1, %cst_6 {dimension_numbers = #tpu.dot_dimension_numbers<[1], [0], [0], [1], [0, 0, 1, 1], [], []>} : vector<8x8xf32>, vector<8x256xf32>, vector<8x256xf32> -> vector<8x256xf32>
    %21 = arith.addf %20, %1 : vector<8x256xf32>
    %c0_7 = arith.constant 0 : index
    %c0_8 = arith.constant 0 : index
    %c0_9 = arith.constant 0 : index
    %22 = vector.load %arg3[%c0_7, %c0_8, %c0_9] : memref<1x8x256xf32, #tpu.memory_space<vmem>>, vector<1x8x256xf32>
    %23 = vector.shape_cast %22 : vector<1x8x256xf32> to vector<8x256xf32>
    %24 = vector.shape_cast %21 : vector<8x256xf32> to vector<1x8x256xf32>
    tpu.vector_store %arg3[%c0_7, %c0_8, %c0_9], %24 {strides = array<i32>} : memref<1x8x256xf32, #tpu.memory_space<vmem>>, vector<1x8x256xf32>,
    return
  }
  func.func @transform_0(%arg0: i32) -> i32 {
    %c0_i32 = arith.constant 0 : i32
    %c0_i32_0 = arith.constant 0 : i32
    return %c0_i32 : i32
  }
  func.func @transform_1(%arg0: i32) -> (i32, i32, i32) {
    %c0_i32 = arith.constant 0 : i32
    %c0_i32_0 = arith.constant 0 : i32
    %c0_i32_1 = arith.constant 0 : i32
    return %arg0, %c0_i32, %c0_i32_0 : i32, i32, i32
  }
  func.func @transform_2(%arg0: i32) -> (i32, i32, i32) {
    %c0_i32 = arith.constant 0 : i32
    %c0_i32_0 = arith.constant 0 : i32
    %c0_i32_1 = arith.constant 0 : i32
    return %arg0, %c0_i32, %c0_i32_0 : i32, i32, i32
  }
}

</mosaic_0001>

<bundles_post_ra>
// kernel: tpu_custom_call.1
= control target key start
LH: loop header
LB: loop body
LE: loop exit
PB: predicated region body
PF: predicated region fallthrough
CT: control target
= control target key end

     0   :  { %s744_s0 = inlined_call_operand.<no memory space> [shape: f32[1], index: 0, kind: input, shape index: {}]   ;;  %s745_s1 = inlined_call_operand.hbm [shape: f32[2,8,256], index: 1, kind: input, shape index: {}]   ;;  %s746_s2 = inlined_call_operand.hbm [shape: f32[2,8,256], index: 2, kind: output, shape index: {}]  }
   0x1   :  { %7 = sst [smem:[#allocation2]] %s744_s0 }
   0x2   :  { %8 = vsyncpa [#allocation4], 0 }
   0x3   :  { %10 = vsyncpa [#allocation4 + $0x1], 0 }
   0x4   :  { %11 = vsyncpa [#allocation5], 0 }
   0x5   :  { %13 = vsyncpa [#allocation5 + $0x1], 0  ;;  %s596_s11 = smov 0   ;;  %s598_s12 = smov 0  }
   0x6   :  { %s600_s13 = smov 0   ;;  %s602_s14 = smov 0  }
   0x7 LB: > { %s617_s0 = sadd.s32 4294967295, %s573_s14   ;;  %s413_s15 = sadd.s32 4294967294, %s573_s14   ;;  %s573_s14 = sphi %s602_s14, %s763_s14   ;;  %s569_s13 = sphi %s600_s13, %s762_s13   ;;  %s565_s12 = sphi %s598_s12, %s761_s12   ;;  %s561_s11 = sphi %s596_s11, %s760_s11  }
   0x8   : > { %s621_s16 = sadd.s32 1, %s573_s14   ;;  %s47_s17 = sadd.s32 1, %s569_s13 }
   0x9   : > { %s44_s18 = ssub.s32 %s573_s14, %s621_s16  ;;  %p54_p0 = scmp.ne.s32.totalorder %s569_s13, %s565_s12 }
   0xa   : > { %p45_p1 = scmp.eq.s32.totalorder %s44_s18, 0  ;;  %p55_p2 = scmp.eq.s32.totalorder %s573_s14, 0 }
   0xb   : > { %p60_p3 = scmp.ne.s32.totalorder %s565_s12, %s561_s11  ;;  %p61_p4 = scmp.eq.s32.totalorder %s617_s0, 0 }
   0xc   : > { %s633_s19 = scalar_select %p45_p1, %s569_s13, %s47_s17  }
   0xd   : > { %p635_p5 = por %p55_p2, %p54_p0  ;;  %p639_p6 = por %p61_p4, %p60_p3 }
   0xe   : > { %p84_p7 = scmp.eq.s32.totalorder %s617_s0, 1  ;;  %p90_p8 = scmp.eq.s32.totalorder %s413_s15, 1 }
   0xf   : > { %s750_s21 = scalar_select %p639_p6, 1, 0 }
  0x10   : > { %p442_p10 = scmp.lt.s32.totalorder %s573_s14, 2  ;;  %p646_p11 = por %p84_p7, %p54_p0 }
  0x11   : > { %p650_p12 = por %p90_p8, %p60_p3  ;;  %s113_s24 = sand.u32 1, %s569_s13  }
  0x12   : > { %s751_s22 = scalar_select %p646_p11, 1, 0 }
  0x13   : > { %s752_s23 = scalar_select %p650_p12, 1, 0 }
  0x14   : > { %s428_s25 = sshll.u32 %s573_s14, 8  ;;  %s416_s26 = sshll.u32 %s113_s24, 4 }
  0x15   : > { %s659_s29 = scalar_lea.hbm %s745_s1, %s428_s25  ;;  %s117_s30 = scalar_lea.vmem [#allocation3], %s416_s26 }
  0x16   : > { %s125_s3 = sshll.u32 %s117_s30, 4  ;;  %p663_p13 = pnand %p442_p10, %p635_p5  ;;  %s667_s3 = int_to_ptr.vmem [resolvable:$true] %s125_s3 }
  0x17   : > { %s114_s5 = scalar_lea.sflag [#allocation4], %s113_s24  ;;  %s481_s6 = scalar_lea.hbm %s659_s29, 256 }
  0x18   : > { %p482_p2 = scmp.ne.s32.totalorder %s659_s29, %s481_s6  ;;  %p483_p3 = pneg %p663_p13 }
  0x19   : > { %s486_s9 = scalar_lea.hbm %s745_s1, 512  ;;  %p487_p5 = scmp.lt.s32.totalorder %s659_s29, %s745_s1 }
  0x1a   : > { %p484_p4 = pnand %p483_p3, %p482_p2  ;;  %p488_p8 = scmp.lt.s32.totalorder %s486_s9, %s481_s6 }
  0x1c   : > { %p485_p7 = pneg %p484_p4  ;;  %p489_p10 = por %p488_p8, %p487_p5 }
  0x1e   : > { %p490_p9 = pnand %p489_p10, %p485_p7 }
  0x20   : > { %493 = shalt.err (!%p490_p9)
}
  0x21   : > { %s494_s17 = scalar_lea.vmem %s667_s3, 256  ;;  %s575_s18 = smov [#allocation3]  }
  0x22   : > { %p495_p0 = scmp.ne.s32.totalorder %s667_s3, %s494_s17  ;;  %s499_s20 = sshll.u32 %s575_s18, 4  ;;  %s500_s20 = int_to_ptr.vmem [resolvable:$false] %s499_s20 }
  0x23   : > { %s501_s24 = scalar_lea.vmem %s500_s20, 512  ;;  %p502_p4 = scmp.lt.s32.totalorder %s667_s3, %s500_s20 }
  0x24   : > { %p497_p1 = pnand %p495_p0, %p483_p3  ;;  %p503_p12 = scmp.lt.s32.totalorder %s501_s24, %s494_s17 }
  0x26   : > { %p498_p2 = pneg %p497_p1  ;;  %p504_p11 = por %p503_p12, %p502_p4 }
  0x28   : > { %p505_p6 = pnand %p504_p11, %p498_p2 }
  0x2a   : > { %508 = shalt.err (!%p505_p6)
}
  0x2b   : > { %437 = dma.hbm_to_vmem [thread:$0]  (!%p663_p13), %s659_s29, 256, %s667_s3, %s114_s5  }
  0x2c   : > { %p754_p9 = scmp.lt.s32.totalorder %s573_s14, 3  ;;  %p755_p7 = scmp.ge.s32.totalorder %s573_s14, 1 }
  0x2e   : > { %p131_p0 = pnand %p755_p7, %p754_p9 }
  0x2f   : > { %s694_s25 = sand.u32 (!%p131_p0), 1, %s565_s12   ;;  %p756_p6 = scmp.ne.s32.totalorder (!%p131_p0), %s750_s21, 0 }
  0x30   : > { %134 = sbr.rel (%p131_p0) target bundleno = 777 (0x309), region = 28  ;;  %s420_s26 = sshll.u32 (!%p131_p0), %s694_s25, 4 }
  0x31   : > { %s137_s27 = scalar_lea.sflag (!%p131_p0), [#allocation4], %s694_s25  ;;  %s140_s28 = scalar_lea.vmem (!%p131_p0), [#allocation3], %s420_s26 }
  0x35   : > { %552 = dma.done.wait (%p756_p6), %s137_s27, 256  }
  0x36   : > { %554 = vsyncadd (%p756_p6), %s137_s27, 4294967040  ;;  %v162_v0 = vld [vmem:[%s140_s28 + $0x8] sm:$0xff]  ;;  %v161_v1 = vld [vmem:[%s140_s28] sm:$0xff]  ;;  %v234_v2 = vlaneseq  ;;  %vm238_vm1 = vcmask 64512   ;;  %v576_v13 = vmov 0.0   ;;  %s233_s21 = sld [smem:[#allocation2]] }
  0x37   : > { %193 = vmatprep.subr.mxu0 %v162_v0  ;;  %227 = vmatprep.mubr.f32.mxu0 %v162_v0  ;;  %s429_s29 = sshll.u32 %s617_s0, 8  ;;  %s160_s30 = scalar_lea.vmem [#allocation6], %s420_s26 }
  0x38   : > { %194 = vmatpush1.xpose.msra.mxu0 %v161_v1  ;;  %285 = vmatprep.subr.mxu1 %v162_v0  ;;  %v235_v3 = vand.u32 127, %v234_v2  ;;  %s343_s3 = sshll.u32 %s160_s30, 4  ;;  %s341_s6 = scalar_lea.hbm %s746_s2, %s429_s29  ;;  %s344_s3 = int_to_ptr.vmem [resolvable:$true] %s343_s3 }
  0x39   : > { %286 = vmatpush1.msra.mxu1 %v161_v1  ;;  %319 = vmatprep.mubr.f32.mxu1 %v576_v13  ;;  %s329_s7 = scalar_lea.sflag [#allocation5], %s694_s25  ;;  %s509_s8 = scalar_lea.vmem %s344_s3, 256 }
  0x3a   : > { %vm236_vm0 = vcmp.lt.s32.totalorder %v235_v3, 4  ;;  %p510_p11 = scmp.ne.s32.totalorder %s344_s3, %s509_s8  ;;  %p757_p12 = scmp.ne.s32.totalorder %s751_s22, 0 }
  0x3b   : > { %228 = vmatmul.mubr.f32.vlgmr.msra.gmra.mxu0 %v161_v1  ;;  %s577_s0 = smov [#allocation6]  }
  0x3c   : > { %v250_v16 = vstv %s233_s21  ;;  %p511_p13 = pnand %p510_p11, %p757_p12  ;;  %s513_s9 = sshll.u32 %s577_s0, 4  ;;  %s514_s9 = int_to_ptr.vmem [resolvable:$false] %s513_s9 }
  0x3d   : > { %s515_s10 = scalar_lea.vmem %s514_s9, 512  ;;  %p516_p3 = scmp.lt.s32.totalorder %s344_s3, %s514_s9 }
  0x3e   : > { %p512_p1 = pneg %p511_p13  ;;  %p517_p5 = scmp.lt.s32.totalorder %s515_s10, %s509_s8 }
  0x40   : > { %p518_p8 = por %p517_p5, %p516_p3 }
  0x42   : > { %p519_p10 = pnand %p518_p8, %p512_p1 }
  0xfb   : > { %v229_v4 = vpop.f32.mrf.mxu0 }
  0xfc   : > { %v237_v5 = vsel %vm236_vm0, %v229_v4, 1e+30 }
  0xfd   : > { %v231_v6 = vpop.f32.mrf.mxu0  ;;  %v239_v7 = vsel %vm238_vm1, %v237_v5, inf }
  0xfe   : > { %240 = vmin.xlane.f32.xlu0 %v239_v7 }
 0x187   : > { %v241_v8 = vpop.xlane.xlu0 %240 }
 0x188   : > { %v242_v9 = vsub.f32 %v241_v8, %v237_v5 }
 0x18a   : > { %v243_v10 = vmul.f32 1.442695, %v242_v9 }
 0x18c   : > { %477 = vpow2.f32 %v243_v10 }
 0x199   : > { %v478_v11 = vpop.eup %477 }
 0x19a   : > { %v245_v12 = vsel %vm238_vm1, %v478_v11, 0.0 }
 0x19b   : > { %246 = vadd.xlane.f32.xlu0 %v245_v12 }
 0x224   : > { %v247_v14 = vpop.xlane.xlu0 %246 }
 0x225   : > { %479 = vrcp.f32 %v247_v14 }
 0x232   : > { %v480_v15 = vpop.eup %479 }
 0x233   : > { %v249_v17 = vmul.f32 %v480_v15, %v478_v11 }
 0x235   : > { %v251_v18 = vmul.f32 %v250_v16, %v249_v17 }
 0x237   : > { %422 = vmatmul.mubr.msk.f32.vlgmr.msra.gmra.mxu1 %vm238_vm1, %v251_v18 }
 0x2f7   : > { %v321_v19 = vpop.f32.mrf.mxu1 }
 0x2f8   : > { %v322_v20 = vadd.f32 %v321_v19, %v161_v1 }
 0x2f9   : > { %v323_v21 = vpop.f32.mrf.mxu1 }
 0x2fa   : > { %326 = vst [vmem:[%s160_s30] sm:$0xff] %v322_v20  ;;  %v324_v22 = vadd.f32 %v323_v21, %v162_v0 }
 0x2fc   : > { %327 = vst [vmem:[%s160_s30 + $0x8] sm:$0xff] %v324_v22 }
 0x2fd   : > { %522 = shalt.err (!%p519_p10)
}
 0x2fe   : > { %s523_s15 = scalar_lea.hbm %s341_s6, 256  ;;  %s527_s20 = scalar_lea.hbm %s746_s2, 512 }
 0x2ff   : > { %p524_p2 = scmp.ne.s32.totalorder %s341_s6, %s523_s15  ;;  %p528_p7 = scmp.lt.s32.totalorder %s341_s6, %s746_s2 }
 0x300   : > { %p529_p0 = scmp.lt.s32.totalorder %s527_s20, %s523_s15 }
 0x301   : > { %p525_p4 = pnand %p524_p2, %p757_p12 }
 0x302   : > { %p530_p6 = por %p529_p0, %p528_p7 }
 0x303   : > { %p526_p9 = pneg %p525_p4 }
 0x305   : > { %p531_p11 = pnand %p530_p6, %p526_p9 }
 0x307   : > { %534 = shalt.err (!%p531_p11)
}
 0x308   : > { %432 = dma.vmem_to_hbm [thread:$0]  (%p757_p12), %s344_s3, 256, %s341_s6, %s329_s7  }
 0x309 PF: > { %s355_s26 = sand.u32 1, %s561_s11   ;;  %p758_p13 = scmp.ne.s32.totalorder %s752_s23, 0 }
 0x30a   : > { %p759_p1 = scmp.ge.s32.totalorder %s573_s14, 2  ;;  %s356_s27 = scalar_lea.sflag [#allocation5], %s355_s26 }
 0x30c   : > { %p439_p3 = pnand %p759_p1, %p758_p13 }
 0x30e   : > { %p440_p5 = pneg %p439_p3 }
 0x310   : > { %556 = dma.done.wait (%p440_p5), %s356_s27, 256  }
 0x311   : > { %558 = vsyncadd (%p440_p5), %s356_s27, 4294967040  ;;  %p16_p8 = scmp.ge.s32.totalorder %s621_s16, 4   ;;  %s760_s11 = smov %s565_s12 }
 0x312   : > { %s761_s12 = smov %s569_s13  ;;  %s762_s13 = smov %s633_s19 }
 0x313   : > { %s763_s14 = smov %s621_s16  ;;  %18 = sbr.rel (!%p16_p8) target bundleno = 7 (0x7), region = 73 }
 0x318   :  { %361 = vsyncpa [#allocation4], 1 }
 0x319   :  { %363 = vsyncpa [#allocation4 + $0x1], 1 }
 0x31a   :  { %364 = vsyncpa [#allocation5], 1 }
 0x31b   :  { %366 = vsyncpa [#allocation5 + $0x1], 1 }

</bundles_post_ra>
